<compile_context>
chip_gen: v7x
topology: tpu7x:2x2x1
jax: 0.10.0
libtpu: 0.0.40
codegen_flags: <defaults>
</compile_context>

<pallas_src>
import functools

import jax
import jax.numpy as jnp
from jax.experimental import pallas as pl
from jax.experimental.pallas import tpu as pltpu

_VMEM_LIMIT = 48 * 1024 * 1024


# ----------------------------------------------------------------------------
# Kernels
# ----------------------------------------------------------------------------
def _pw_bn_silu_kernel(x_ref, w_ref, scale_ref, bias_ref, o_ref):
    """1x1 conv (token-tiled bf16 MXU matmul) + folded BatchNorm + SiLU."""
    y = jnp.dot(x_ref[...], w_ref[...], preferred_element_type=jnp.float32)
    y = y * scale_ref[...] + bias_ref[...]
    y = y * jax.nn.sigmoid(y)                      # SiLU, f32 epilogue
    o_ref[...] = y.astype(o_ref.dtype)


def _dw_bn_kernel(x_ref, w_ref, scale_ref, bias_ref, o_ref, *, H, WC, C):
    """Depthwise 3x3 conv (stride 1, pad 1) + folded BN on an (H, W*C) tile.

    Lane-dense layout: channels are folded into the lane dim, so the W-shifts are
    128-aligned column shifts and the H-shifts are two 1-row moves.  No padded
    halo scratch, no full-buffer zeroing.  9 VPU FMAs in f32.
    """
    x = x_ref[0].astype(jnp.float32)               # (H, W*C)
    w = w_ref[...].astype(jnp.float32)             # (9, W*C)  taps tiled over W
    zrow = jnp.zeros((1, WC), jnp.float32)
    zcol = jnp.zeros((H, C), jnp.float32)

    # Row-shifted copies, index kh -> dh = kh - 1 (reads x[h + dh], zero outside).
    x_rows = [
        jnp.concatenate([zrow, x[:H - 1, :]], axis=0),   # dh = -1
        x,                                               # dh =  0
        jnp.concatenate([x[1:, :], zrow], axis=0),       # dh = +1
    ]

    acc = jnp.zeros((H, WC), jnp.float32)
    for kh in range(3):
        xr = x_rows[kh]
        for kw in range(3):
            dw = kw - 1
            if dw == 0:
                s = xr
            elif dw == 1:    # read pixel to the right: shift columns left by C
                s = jnp.concatenate([xr[:, C:], zcol], axis=1)
            else:            # dw == -1
                s = jnp.concatenate([zcol, xr[:, :WC - C]], axis=1)
            t = kh * 3 + kw
            acc = acc + s * w[t:t + 1, :]
    o_ref[0] = (acc * scale_ref[...] + bias_ref[...]).astype(o_ref.dtype)


def _ln_mqa_pw2_kernel(x_ref, g_ref, b_ref, wqkv_ref, wo_ref, bo_ref, o_ref,
                       *, num_heads, head_dim):
    """LayerNorm -> Mobile Multi-Query Attention -> (proj + conv_pw2 + BN3 folded).

    * one fused QKV matmul (columns [Q | V | K], wq pre-scaled by hd**-0.5)
    * one logits matmul for all heads (shared K pushed once)
    * one full-width output projection matmul over concatenated heads
    Matmuls bf16 / f32-accumulate; LN stats and softmax in f32 (exact division).
    """
    nh, hd = num_heads, head_dim
    x = x_ref[0].astype(jnp.float32)               # (N, C)
    N, C = x.shape

    # LayerNorm (f32 stats)
    mu = jnp.mean(x, axis=-1, keepdims=True)
    var = jnp.mean(jnp.square(x - mu), axis=-1, keepdims=True)
    xn = (x - mu) * jax.lax.rsqrt(var + 1e-5)
    xn = xn * g_ref[...] + b_ref[...]
    xb = xn.astype(jnp.bfloat16)

    # Fused QKV projection: single wide MXU call.
    qkv = jnp.dot(xb, wqkv_ref[...], preferred_element_type=jnp.float32)  # (N, 2C+hd)

    # Head-major flat Q (nh*N, hd) via cheap lane slices + major-dim concat.
    q2 = jnp.concatenate([qkv[:, h * hd:(h + 1) * hd] for h in range(nh)],
                         axis=0).astype(jnp.bfloat16)                      # (nh*N, hd)
    k = qkv[:, 2 * C:2 * C + hd].astype(jnp.bfloat16)                      # (N, hd)

    # All heads' logits in one MXU call; hd**-0.5 already folded into wq.
    logits = jax.lax.dot_general(q2, k, (((1,), (1,)), ((), ())),
                                 preferred_element_type=jnp.float32)       # (nh*N, N)

    m = jnp.max(logits, axis=-1, keepdims=True)
    e = jnp.exp(logits - m)
    p = e / jnp.sum(e, axis=-1, keepdims=True)                             # exact div

    # Per-head attention-weighted values (batched over the leading head dim).
    p3 = p.reshape(nh, N, N).astype(jnp.bfloat16)
    v3 = jnp.stack([qkv[:, C + h * hd:C + (h + 1) * hd] for h in range(nh)],
                   axis=0).astype(jnp.bfloat16)                            # (nh, N, hd)
    ctx = jnp.einsum('hqk,hkd->hqd', p3, v3,
                     preferred_element_type=jnp.float32)                   # (nh, N, hd)

    # Concatenate heads along lanes -> one full-K output projection
    # (MQA proj + conv_pw2 + BN3 folded into wo / bo).
    ctx_cat = jnp.concatenate([ctx[h] for h in range(nh)], axis=-1)        # (N, C)
    out = jnp.dot(ctx_cat.astype(jnp.bfloat16), wo_ref[...],
                  preferred_element_type=jnp.float32) + bo_ref[...]        # (N, oup)
    o_ref[0] = out.astype(o_ref.dtype)


# ----------------------------------------------------------------------------
# Pallas wrappers
# ----------------------------------------------------------------------------
def pw_conv_bn_silu(x_tok, w_bf16, scale, bias, block_rows=512):
    """Token-tiled 1x1 conv + BN + SiLU.  Weights stay resident per step."""
    M, Cin = x_tok.shape
    Cout = w_bf16.shape[1]
    TM = min(M, block_rows)
    TM = max(8, (TM // 8) * 8)
    return pl.pallas_call(
        _pw_bn_silu_kernel,
        out_shape=jax.ShapeDtypeStruct((M, Cout), jnp.bfloat16),
        grid=(pl.cdiv(M, TM),),
        in_specs=[
            pl.BlockSpec((TM, Cin), lambda i: (i, 0)),
            pl.BlockSpec((Cin, Cout), lambda i: (0, 0)),
            pl.BlockSpec((1, Cout), lambda i: (0, 0)),
            pl.BlockSpec((1, Cout), lambda i: (0, 0)),
        ],
        out_specs=pl.BlockSpec((TM, Cout), lambda i: (i, 0)),
        compiler_params=pltpu.CompilerParams(
            dimension_semantics=("parallel",),
            vmem_limit_bytes=_VMEM_LIMIT),
    )(x_tok, w_bf16, scale, bias)


def dw_conv_bn(x_rows, w_taps, scale_w, bias_w, C):
    """Depthwise 3x3 + BN on lane-dense (B, H, W*C) activations, tiled over batch."""
    B, H, WC = x_rows.shape
    kernel = functools.partial(_dw_bn_kernel, H=H, WC=WC, C=C)
    return pl.pallas_call(
        kernel,
        out_shape=jax.ShapeDtypeStruct((B, H, WC), jnp.bfloat16),
        grid=(B,),
        in_specs=[
            pl.BlockSpec((1, H, WC), lambda b: (b, 0, 0)),
            pl.BlockSpec((9, WC), lambda b: (0, 0)),
            pl.BlockSpec((1, WC), lambda b: (0, 0)),
            pl.BlockSpec((1, WC), lambda b: (0, 0)),
        ],
        out_specs=pl.BlockSpec((1, H, WC), lambda b: (b, 0, 0)),
        compiler_params=pltpu.CompilerParams(
            dimension_semantics=("parallel",),
            vmem_limit_bytes=_VMEM_LIMIT),
    )(x_rows, w_taps, scale_w, bias_w)


def ln_mqa_pw2(tok, ln_g, ln_b, wqkv, wo, bo, num_heads):
    """Fused LayerNorm + MobileMQA + (proj, conv_pw2, BN3 folded)."""
    B, N, C = tok.shape
    hd = C // num_heads
    oup = wo.shape[1]
    kernel = functools.partial(_ln_mqa_pw2_kernel, num_heads=num_heads,
                               head_dim=hd)
    return pl.pallas_call(
        kernel,
        out_shape=jax.ShapeDtypeStruct((B, N, oup), jnp.float32),
        grid=(B,),
        in_specs=[
            pl.BlockSpec((1, N, C), lambda b: (b, 0, 0)),
            pl.BlockSpec((1, C), lambda b: (0, 0)),
            pl.BlockSpec((1, C), lambda b: (0, 0)),
            pl.BlockSpec((C, 2 * C + hd), lambda b: (0, 0)),
            pl.BlockSpec((C, oup), lambda b: (0, 0)),
            pl.BlockSpec((1, oup), lambda b: (0, 0)),
        ],
        out_specs=pl.BlockSpec((1, N, oup), lambda b: (b, 0, 0)),
        compiler_params=pltpu.CompilerParams(
            dimension_semantics=("parallel",),
            vmem_limit_bytes=_VMEM_LIMIT),
    )(tok, ln_g, ln_b, wqkv, wo, bo)


# ----------------------------------------------------------------------------
# Module: parameters + forward
# ----------------------------------------------------------------------------
def make_divisible(value, divisor=8, min_value=None, round_down_protect=True):
    if min_value is None:
        min_value = divisor
    new_value = max(min_value, int(value + divisor / 2) // divisor * divisor)
    if round_down_protect and new_value < 0.9 * value:
        new_value += divisor
    return int(new_value)


def _bn_fold(gamma, beta, mean, var, eps=1e-5):
    scale = gamma / jnp.sqrt(var + eps)
    bias = beta - mean * scale
    return scale[None, :], bias[None, :]


def init_params(key, inp, oup, expand_ratio=4, num_heads=4):
    hidden = make_divisible(inp * expand_ratio, 8)
    ks = jax.random.split(key, 16)

    def n(k, shape, fan_in):
        return jax.random.normal(k, shape, jnp.float32) / jnp.sqrt(float(fan_in))

    def bn(k, c):
        k1, k2, k3, k4 = jax.random.split(k, 4)
        gamma = 1.0 + 0.1 * jax.random.normal(k1, (c,), jnp.float32)
        beta = 0.1 * jax.random.normal(k2, (c,), jnp.float32)
        mean = 0.1 * jax.random.normal(k3, (c,), jnp.float32)
        var = 0.5 + 0.2 * jnp.abs(jax.random.normal(k4, (c,), jnp.float32))
        return gamma, beta, mean, var

    p = dict(hidden=hidden, num_heads=num_heads)
    p['w_pw1'] = n(ks[0], (inp, hidden), inp)           # 1x1 conv, (Cin, Cout)
    p['bn1'] = bn(ks[1], hidden)
    p['w_dw'] = n(ks[2], (3, 3, hidden), 9)              # depthwise 3x3, (kh, kw, C)
    p['bn2'] = bn(ks[3], hidden)
    p['ln_g'] = 1.0 + 0.1 * jax.random.normal(ks[4], (hidden,), jnp.float32)
    p['ln_b'] = 0.1 * jax.random.normal(ks[5], (hidden,), jnp.float32)
    hd = hidden // num_heads
    p['wq'] = n(ks[6], (hidden, hidden), hidden)          # y = x @ W
    p['wk'] = n(ks[7], (hidden, hd), hidden)
    p['wv'] = n(ks[8], (hidden, hidden), hidden)
    p['wp'] = n(ks[9], (hidden, hidden), hidden)
    p['bp'] = 0.1 * jax.random.normal(ks[10], (hidden,), jnp.float32)
    p['w_pw2'] = n(ks[11], (hidden, oup), hidden)
    p['bn3'] = bn(ks[12], oup)
    return p


def enhanced_uib_forward(x_nchw, p):
    """Pallas implementation of EnhancedUIB.forward (use_mqa=True, eval-mode BN)."""
    B, Cin, H, W = x_nchw.shape
    hidden = p['hidden']
    nh = p['num_heads']
    hd = hidden // nh
    oup = p['w_pw2'].shape[1]

    x = jnp.transpose(x_nchw, (0, 2, 3, 1)).astype(jnp.float32)     # NHWC
    x_tok = x.reshape(B * H * W, Cin).astype(jnp.bfloat16)

    # conv_pw1: 1x1 conv + BN + SiLU (token-tiled); bf16 inter-stage activation.
    s1, b1 = _bn_fold(*p['bn1'])
    t = pw_conv_bn_silu(x_tok, p['w_pw1'].astype(jnp.bfloat16), s1, b1)

    # conv_dw: depthwise 3x3 + BN (no act), lane-dense (B, H, W*hidden) layout.
    s2, b2 = _bn_fold(*p['bn2'])
    w_taps = jnp.stack([jnp.tile(p['w_dw'][kh, kw], W)
                        for kh in range(3) for kw in range(3)])      # (9, W*hidden)
    s2w = jnp.tile(s2[0], W)[None, :]
    b2w = jnp.tile(b2[0], W)[None, :]
    t_rows = t.reshape(B, H, W * hidden)                             # free reshape
    d = dw_conv_bn(t_rows, w_taps, s2w, b2w, C=hidden)               # bf16

    # LayerNorm + MobileMQA, with conv_pw2 + BN3 folded into the projection.
    s3, b3 = _bn_fold(*p['bn3'])
    w_pw2_s = p['w_pw2'] * s3                                        # (hid, oup)
    wo = p['wp'] @ w_pw2_s                                           # (hid, oup), f32 fold
    bo = p['bp'] @ w_pw2_s + b3[0]                                   # (oup,)
    scale = hd ** (-0.5)
    wqkv = jnp.concatenate([p['wq'] * scale, p['wv'], p['wk']], axis=1)  # [Q|V|K]

    tok = d.reshape(B, H * W, hidden)                                # free reshape
    out_tok = ln_mqa_pw2(tok, p['ln_g'][None, :], p['ln_b'][None, :],
                         wqkv.astype(jnp.bfloat16), wo.astype(jnp.bfloat16),
                         bo[None, :], nh)

    out = out_tok.reshape(B, H, W, oup)
    return jnp.transpose(out, (0, 3, 1, 2))                          # NCHW


# ----------------------------------------------------------------------------
# Pure-JAX f32 reference (sanity check)
# ----------------------------------------------------------------------------
def reference_forward(x_nchw, p):
    eps = 1e-5
    x = jnp.transpose(x_nchw, (0, 2, 3, 1)).astype(jnp.float32)
    g1, be1, m1, v1 = p['bn1']
    y = jnp.einsum('bhwc,cd->bhwd', x, p['w_pw1'])
    y = (y - m1) / jnp.sqrt(v1 + eps) * g1 + be1
    y = y * jax.nn.sigmoid(y)

    g2, be2, m2, v2 = p['bn2']
    rhs = p['w_dw'][:, :, None, :]                                   # (3,3,1,C)
    z = jax.lax.conv_general_dilated(y, rhs, (1, 1), 'SAME',
                                     dimension_numbers=('NHWC', 'HWIO', 'NHWC'),
                                     feature_group_count=y.shape[-1])
    z = (z - m2) / jnp.sqrt(v2 + eps) * g2 + be2

    B, H, W, C = z.shape
    nh = p['num_heads']
    hd = C // nh
    t = z.reshape(B, H * W, C)
    mu = jnp.mean(t, -1, keepdims=True)
    var = jnp.mean((t - mu) ** 2, -1, keepdims=True)
    tn = (t - mu) / jnp.sqrt(var + 1e-5) * p['ln_g'] + p['ln_b']
    q = tn @ p['wq']
    k = tn @ p['wk']
    v = tn @ p['wv']
    qh = q.reshape(B, -1, nh, hd).transpose(0, 2, 1, 3)
    vh = v.reshape(B, -1, nh, hd).transpose(0, 2, 1, 3)
    attn = jnp.einsum('bhnd,bmd->bhnm', qh, k) * (hd ** -0.5)
    attn = jax.nn.softmax(attn, axis=-1)
    o = jnp.einsum('bhnm,bhmd->bhnd', attn, vh).transpose(0, 2, 1, 3).reshape(B, -1, C)
    o = o @ p['wp'] + p['bp']
    z2 = o.reshape(B, H, W, C)

    g3, be3, m3, v3 = p['bn3']
    out = jnp.einsum('bhwc,cd->bhwd', z2, p['w_pw2'])
    out = (out - m3) / jnp.sqrt(v3 + eps) * g3 + be3
    return jnp.transpose(out, (0, 3, 1, 2))


# ----------------------------------------------------------------------------
if __name__ == "__main__":
    # Lane-dense demo sizes: hidden = make_divisible(32*4, 8) = 128, head_dim = 32.
    B, inp, H, W = 2, 32, 16, 16
    oup = 128

    key = jax.random.PRNGKey(0)
    kx, kp = jax.random.split(key)
    x = jax.random.normal(kx, (B, inp, H, W), jnp.float32)
    params = init_params(kp, inp, oup, expand_ratio=4, num_heads=4)

    out = jax.block_until_ready(enhanced_uib_forward(x, params))
    assert out.shape == (B, oup, H, W), out.shape

    ref = jax.block_until_ready(reference_forward(x, params))
    max_err = float(jnp.max(jnp.abs(out - ref)))
    ref_scale = float(jnp.max(jnp.abs(ref)))
    # bf16 MXU operands + bf16 inter-stage activations -> relative tolerance.
    assert max_err < 5e-2 * (ref_scale + 1.0), (
        f"mismatch vs reference: {max_err} (ref scale {ref_scale})")

    print("KERNEL_OK")
</pallas_src>

<mosaic_0001>
module attributes {stable_mosaic.version = 11 : i64} {
  func.func @_pw_bn_silu_kernel(%arg0: i32, %arg1: memref<512x32xbf16, #tpu.memory_space<vmem>>, %arg2: memref<32x128xbf16, #tpu.memory_space<vmem>>, %arg3: memref<1x128xf32, #tpu.memory_space<vmem>>, %arg4: memref<1x128xf32, #tpu.memory_space<vmem>>, %arg5: memref<512x128xbf16, #tpu.memory_space<vmem>>) attributes {dimension_semantics = [#tpu.dimension_semantics<parallel>], iteration_bounds = array<i64: 1>, scalar_prefetch = 0 : i64, scratch_operands = 0 : i64, tpu.core_type = #tpu.core_type<tc>, window_params = [{transform_indices = @transform_0, window_bounds = array<i64: 512, 32>}, {pipeline_mode = #tpu.pipeline_mode<synchronous>, transform_indices = @transform_1, window_bounds = array<i64: 32, 128>}, {pipeline_mode = #tpu.pipeline_mode<synchronous>, transform_indices = @transform_2, window_bounds = array<i64: 1, 128>}, {pipeline_mode = #tpu.pipeline_mode<synchronous>, transform_indices = @transform_3, window_bounds = array<i64: 1, 128>}, {transform_indices = @transform_4, window_bounds = array<i64: 512, 128>}]} {
    %c0 = arith.constant 0 : index
    %c0_0 = arith.constant 0 : index
    %0 = vector.load %arg1[%c0, %c0_0] : memref<512x32xbf16, #tpu.memory_space<vmem>>, vector<512x32xbf16>
    %c0_1 = arith.constant 0 : index
    %c0_2 = arith.constant 0 : index
    %1 = vector.load %arg2[%c0_1, %c0_2] : memref<32x128xbf16, #tpu.memory_space<vmem>>, vector<32x128xbf16>
    %cst = arith.constant dense<0.000000e+00> : vector<512x128xf32>
    %2 = tpu.matmul %0, %1, %cst {dimension_numbers = #tpu.dot_dimension_numbers<[1], [0], [0], [1], [0, 0, 1, 1], [], []>} : vector<512x32xbf16>, vector<32x128xbf16>, vector<512x128xf32> -> vector<512x128xf32>
    %c0_3 = arith.constant 0 : index
    %c0_4 = arith.constant 0 : index
    %3 = vector.load %arg3[%c0_3, %c0_4] : memref<1x128xf32, #tpu.memory_space<vmem>>, vector<1x128xf32>
    %4 = vector.broadcast %3 : vector<1x128xf32> to vector<512x128xf32>
    %5 = arith.mulf %2, %4 : vector<512x128xf32>
    %c0_5 = arith.constant 0 : index
    %c0_6 = arith.constant 0 : index
    %6 = vector.load %arg4[%c0_5, %c0_6] : memref<1x128xf32, #tpu.memory_space<vmem>>, vector<1x128xf32>
    %7 = vector.broadcast %6 : vector<1x128xf32> to vector<512x128xf32>
    %8 = arith.addf %5, %7 : vector<512x128xf32>
    %9 = arith.negf %8 : vector<512x128xf32>
    %10 = math.exp %9 : vector<512x128xf32>
    %cst_7 = arith.constant 1.000000e+00 : f32
    %11 = vector.broadcast %cst_7 : f32 to vector<512x128xf32>
    %12 = arith.addf %11, %10 : vector<512x128xf32>
    %13 = arith.divf %11, %12 : vector<512x128xf32>
    %14 = arith.mulf %8, %13 : vector<512x128xf32>
    %15 = arith.truncf %14 : vector<512x128xf32> to vector<512x128xbf16>
    %c0_8 = arith.constant 0 : index
    %c0_9 = arith.constant 0 : index
    %16 = vector.load %arg5[%c0_8, %c0_9] : memref<512x128xbf16, #tpu.memory_space<vmem>>, vector<512x128xbf16>
    tpu.vector_store %arg5[%c0_8, %c0_9], %15 {strides = array<i32>} : memref<512x128xbf16, #tpu.memory_space<vmem>>, vector<512x128xbf16>,
    return
  }
  func.func @transform_0(%arg0: i32) -> (i32, i32) {
    %c0_i32 = arith.constant 0 : i32
    %c0_i32_0 = arith.constant 0 : i32
    return %arg0, %c0_i32 : i32, i32
  }
  func.func @transform_1(%arg0: i32) -> (i32, i32) {
    %c0_i32 = arith.constant 0 : i32
    %c0_i32_0 = arith.constant 0 : i32
    %c0_i32_1 = arith.constant 0 : i32
    return %c0_i32, %c0_i32_0 : i32, i32
  }
  func.func @transform_2(%arg0: i32) -> (i32, i32) {
    %c0_i32 = arith.constant 0 : i32
    %c0_i32_0 = arith.constant 0 : i32
    %c0_i32_1 = arith.constant 0 : i32
    return %c0_i32, %c0_i32_0 : i32, i32
  }
  func.func @transform_3(%arg0: i32) -> (i32, i32) {
    %c0_i32 = arith.constant 0 : i32
    %c0_i32_0 = arith.constant 0 : i32
    %c0_i32_1 = arith.constant 0 : i32
    return %c0_i32, %c0_i32_0 : i32, i32
  }
  func.func @transform_4(%arg0: i32) -> (i32, i32) {
    %c0_i32 = arith.constant 0 : i32
    %c0_i32_0 = arith.constant 0 : i32
    return %arg0, %c0_i32 : i32, i32
  }
}

</mosaic_0001>

<bundles_post_ra>
// kernel: tpu_custom_call.1
= control target key start
LH: loop header
LB: loop body
LE: loop exit
PB: predicated region body
PF: predicated region fallthrough
CT: control target
= control target key end

     0   :  { %vm259_vm0 = vcmask 261120   ;;  %s3148_s0 = inlined_call_operand.vmem [shape: bf16[512,32], index: 0, kind: input, shape index: {}]   ;;  %s3149_s1 = inlined_call_operand.vmem [shape: bf16[32,128], index: 1, kind: input, shape index: {}]   ;;  %s3150_s2 = inlined_call_operand.vmem [shape: f32[1,128], index: 2, kind: input, shape index: {}]   ;;  %s3151_s3 = inlined_call_operand.vmem [shape: f32[1,128], index: 3, kind: input, shape index: {}]   ;;  %s3152_s4 = inlined_call_operand.hbm [shape: bf16[512,128], index: 4, kind: output, shape index: {}]  }
   0x1   :  { %v2131_v0 = vld [vmem:[%s3149_s1] sm:$0xff]   ;;  %v2132_v1 = vld [vmem:[%s3149_s1 + $0x8] sm:$0xff]   ;;  %v2137_v6 = vld [vmem:[%s3148_s0 + $0x10] sm:$0xff]  }
   0x2   :  { %2056 = vmatprep.subr.bf16.mxu0 %v2131_v0  ;;  %2124 = vmatprep.subr.bf16.mxu1 %v2131_v0  ;;  %v2133_v2 = vld [vmem:[%s3148_s0] sm:$0xff]   ;;  %v2135_v4 = vld [vmem:[%s3148_s0 + $0x8] sm:$0xff]   ;;  %v2138_v7 = vld [vmem:[%s3148_s0 + $0x90] sm:$0xff]  }
   0x3   :  { %2057 = vmatpush3.bf16.msra.mxu0 %v2131_v0  ;;  %2126 = vmatpush3.bf16.msra.mxu1 %v2131_v0  ;;  %v2134_v3 = vld [vmem:[%s3148_s0 + $0x80] sm:$0xff]   ;;  %v2136_v5 = vld [vmem:[%s3148_s0 + $0x88] sm:$0xff]   ;;  %v2139_v8 = vld [vmem:[%s3148_s0 + $0x18] sm:$0xff]  }
   0x4   :  { %2058 = vmatprep.subr.bf16.mxu0 %v2132_v1  ;;  %2125 = vmatprep.subr.bf16.mxu1 %v2132_v1  ;;  %v2140_v9 = vld [vmem:[%s3148_s0 + $0x98] sm:$0xff]   ;;  %v2141_v10 = vld [vmem:[%s3148_s0 + $0x20] sm:$0xff]   ;;  %v2143_v12 = vld [vmem:[%s3148_s0 + $0x28] sm:$0xff]  }
   0x5   :  { %2060 = vmatprep.mubr.msk.bf16.mxu0 %vm259_vm0, %v2133_v2  ;;  %2092 = vmatprep.mubr.msk.bf16.mxu1 %vm259_vm0, %v2134_v3  ;;  %v2142_v11 = vld [vmem:[%s3148_s0 + $0xa0] sm:$0xff]   ;;  %v2144_v13 = vld [vmem:[%s3148_s0 + $0xa8] sm:$0xff]   ;;  %v2145_v14 = vld [vmem:[%s3148_s0 + $0x30] sm:$0xff]  }
   0x6   :  { %v2146_v15 = vld [vmem:[%s3148_s0 + $0xb0] sm:$0xff]   ;;  %v2147_v16 = vld [vmem:[%s3148_s0 + $0x38] sm:$0xff]   ;;  %v2149_v18 = vld [vmem:[%s3148_s0 + $0x40] sm:$0xff]  }
   0x7   :  { %2059 = vmatpush3.bf16.msra.mxu0 %v2132_v1  ;;  %2127 = vmatpush3.bf16.msra.mxu1 %v2132_v1  ;;  %v2148_v17 = vld [vmem:[%s3148_s0 + $0xb8] sm:$0xff]   ;;  %v2150_v19 = vld [vmem:[%s3148_s0 + $0xc0] sm:$0xff]  }
   0xa   :  { %2061 = vmatmul.mubr.msk.bf16.vlgmr.msra.gmra.mrb[0].mxu0 %vm259_vm0, %v2135_v4  ;;  %2093 = vmatmul.mubr.msk.bf16.vlgmr.msra.gmra.mrb[0].mxu1 %vm259_vm0, %v2136_v5 }
   0xb   :  { %2064 = vmatprep.mubr.msk.bf16.mxu0 %vm259_vm0, %v2137_v6  ;;  %2096 = vmatprep.mubr.msk.bf16.mxu1 %vm259_vm0, %v2138_v7 }
  0x12   :  { %2065 = vmatmul.mubr.msk.bf16.gmra.mrb[4].mxu0 %vm259_vm0, %v2139_v8  ;;  %2097 = vmatmul.mubr.msk.bf16.gmra.mrb[4].mxu1 %vm259_vm0, %v2140_v9 }
  0x13   :  { %2068 = vmatprep.mubr.msk.bf16.mxu0 %vm259_vm0, %v2141_v10  ;;  %2100 = vmatprep.mubr.msk.bf16.mxu1 %vm259_vm0, %v2142_v11 }
  0x1a   :  { %2069 = vmatmul.mubr.msk.bf16.gmra.mrb[8].mxu0 %vm259_vm0, %v2143_v12  ;;  %2101 = vmatmul.mubr.msk.bf16.gmra.mrb[8].mxu1 %vm259_vm0, %v2144_v13 }
  0x1b   :  { %2072 = vmatprep.mubr.msk.bf16.mxu0 %vm259_vm0, %v2145_v14  ;;  %2104 = vmatprep.mubr.msk.bf16.mxu1 %vm259_vm0, %v2146_v15 }
  0x22   :  { %2073 = vmatmul.mubr.msk.bf16.gmra.mrb[12].mxu0 %vm259_vm0, %v2147_v16  ;;  %2105 = vmatmul.mubr.msk.bf16.gmra.mrb[12].mxu1 %vm259_vm0, %v2148_v17 }
  0x23   :  { %9 = vsyncpa [#allocation3], 0  ;;  %2076 = vmatprep.mubr.msk.bf16.mxu0 %vm259_vm0, %v2149_v18  ;;  %2108 = vmatprep.mubr.msk.bf16.mxu1 %vm259_vm0, %v2150_v19  ;;  %v2151_v20 = vld [vmem:[%s3148_s0 + $0x48] sm:$0xff]   ;;  %v2153_v22 = vld [vmem:[%s3148_s0 + $0x50] sm:$0xff]  }
  0x24   :  { %v2152_v21 = vld [vmem:[%s3148_s0 + $0xc8] sm:$0xff]   ;;  %v2154_v23 = vld [vmem:[%s3148_s0 + $0xd0] sm:$0xff]   ;;  %v2155_v24 = vld [vmem:[%s3148_s0 + $0x58] sm:$0xff]  }
  0x25   :  { %v2156_v25 = vld [vmem:[%s3148_s0 + $0xd8] sm:$0xff]   ;;  %v2157_v26 = vld [vmem:[%s3148_s0 + $0x60] sm:$0xff]   ;;  %v2159_v28 = vld [vmem:[%s3148_s0 + $0x68] sm:$0xff]  }
  0x26   :  { %v2158_v27 = vld [vmem:[%s3148_s0 + $0xe0] sm:$0xff]   ;;  %v2160_v29 = vld [vmem:[%s3148_s0 + $0xe8] sm:$0xff]   ;;  %v2161_v30 = vld [vmem:[%s3148_s0 + $0x70] sm:$0xff]  }
  0x27   :  { %v2162_v31 = vld [vmem:[%s3148_s0 + $0xf0] sm:$0xff]   ;;  %v2163_v32 = vld [vmem:[%s3148_s0 + $0x78] sm:$0xff]   ;;  %v2612_v34 = vld [vmem:[%s3150_s2] ss:$0 sm:$0xff] }
  0x28   :  { %v2164_v33 = vld [vmem:[%s3148_s0 + $0xf8] sm:$0xff]   ;;  %v2617_v36 = vld [vmem:[%s3151_s3] ss:$0 sm:$0xff] }
  0x2a   :  { %2077 = vmatmul.mubr.msk.bf16.gmra.mrb[16].mxu0 %vm259_vm0, %v2151_v20  ;;  %2109 = vmatmul.mubr.msk.bf16.gmra.mrb[16].mxu1 %vm259_vm0, %v2152_v21 }
  0x2b   :  { %2080 = vmatprep.mubr.msk.bf16.mxu0 %vm259_vm0, %v2153_v22  ;;  %2112 = vmatprep.mubr.msk.bf16.mxu1 %vm259_vm0, %v2154_v23 }
  0x32   :  { %2081 = vmatmul.mubr.msk.bf16.gmra.mrb[20].mxu0 %vm259_vm0, %v2155_v24  ;;  %2113 = vmatmul.mubr.msk.bf16.gmra.mrb[20].mxu1 %vm259_vm0, %v2156_v25 }
  0x33   :  { %2084 = vmatprep.mubr.msk.bf16.mxu0 %vm259_vm0, %v2157_v26  ;;  %2116 = vmatprep.mubr.msk.bf16.mxu1 %vm259_vm0, %v2158_v27 }
  0x3a   :  { %2085 = vmatmul.mubr.msk.bf16.gmra.mrb[24].mxu0 %vm259_vm0, %v2159_v28  ;;  %2117 = vmatmul.mubr.msk.bf16.gmra.mrb[24].mxu1 %vm259_vm0, %v2160_v29 }
  0x3b   :  { %2088 = vmatprep.mubr.msk.bf16.mxu0 %vm259_vm0, %v2161_v30  ;;  %2120 = vmatprep.mubr.msk.bf16.mxu1 %vm259_vm0, %v2162_v31 }
  0x42   :  { %2089 = vmatmul.mubr.msk.bf16.gmra.mrb[28].mxu0 %vm259_vm0, %v2163_v32  ;;  %2121 = vmatmul.mubr.msk.bf16.gmra.mrb[28].mxu1 %vm259_vm0, %v2164_v33 }
  0xdd   :  { %v2062_v35 = vpop.f32.mrb[0].mxu0  ;;  %v2094_v37 = vpop.f32.mrb[0].mxu1 }
  0xde   :  { %v654_v38 = vmul.f32 %v2062_v35, %v2612_v34  ;;  %v686_v39 = vmul.f32 %v2094_v37, %v2612_v34  ;;  %v390_v40 = vpop.f32.mrb[1].mxu0  ;;  %v518_v41 = vpop.f32.mrb[1].mxu1 }
  0xdf   :  { %v652_v42 = vmul.f32 %v2612_v34, %v390_v40  ;;  %v684_v43 = vmul.f32 %v2612_v34, %v518_v41  ;;  %v2063_v44 = vpop.f32.mrb[2].mxu0  ;;  %v2095_v45 = vpop.f32.mrb[2].mxu1 }
  0xe0   :  { %v2624_v46 = vadd.f32 %v2617_v36, %v654_v38  ;;  %v2627_v47 = vadd.f32 %v2617_v36, %v686_v39  ;;  %v655_v48 = vmul.f32 %v2063_v44, %v2612_v34  ;;  %v687_v49 = vmul.f32 %v2095_v45, %v2612_v34  ;;  %v393_v50 = vpop.f32.mrb[3].mxu0  ;;  %v521_v51 = vpop.f32.mrb[3].mxu1 }
  0xe1   :  { %v2632_v52 = vadd.f32 %v2617_v36, %v652_v42  ;;  %v2635_v53 = vadd.f32 %v2617_v36, %v684_v43  ;;  %v653_v54 = vmul.f32 %v2612_v34, %v393_v50  ;;  %v685_v55 = vmul.f32 %v2612_v34, %v521_v51 }
  0xe2   :  { %v1641_v56 = vmul.f32 -1.442695, %v2624_v46  ;;  %v1673_v57 = vmul.f32 -1.442695, %v2627_v47  ;;  %v2642_v58 = vadd.f32 %v2617_v36, %v655_v48  ;;  %v2645_v59 = vadd.f32 %v2617_v36, %v687_v49 }
  0xe3   :  { %v1639_v60 = vmul.f32 -1.442695, %v2632_v52  ;;  %v1671_v61 = vmul.f32 -1.442695, %v2635_v53  ;;  %v2650_v62 = vadd.f32 %v2617_v36, %v653_v54  ;;  %v2653_v63 = vadd.f32 %v2617_v36, %v685_v55 }
  0xe4   :  { %2165 = vpow2.f32 %v1641_v56  ;;  %v1642_v0 = vmul.f32 -1.442695, %v2642_v58  ;;  %v1674_v1 = vmul.f32 -1.442695, %v2645_v59 }
  0xe5   :  { %2167 = vpow2.f32 %v1673_v57  ;;  %v2066_v2 = vpop.f32.mrb[4].mxu0  ;;  %v2098_v3 = vpop.f32.mrb[4].mxu1  ;;  %v1640_v4 = vmul.f32 -1.442695, %v2650_v62  ;;  %v1672_v9 = vmul.f32 -1.442695, %v2653_v63 }
  0xe6   :  { %2169 = vpow2.f32 %v1639_v60  ;;  %v658_v5 = vmul.f32 %v2066_v2, %v2612_v34  ;;  %v690_v6 = vmul.f32 %v2098_v3, %v2612_v34  ;;  %v406_v7 = vpop.f32.mrb[5].mxu0  ;;  %v534_v8 = vpop.f32.mrb[5].mxu1 }
  0xe7   :  { %2171 = vpow2.f32 %v1671_v61  ;;  %v656_v10 = vmul.f32 %v2612_v34, %v406_v7  ;;  %v688_v11 = vmul.f32 %v2612_v34, %v534_v8  ;;  %v2067_v12 = vpop.f32.mrb[6].mxu0  ;;  %v2099_v13 = vpop.f32.mrb[6].mxu1 }
  0xe8   :  { %2173 = vpow2.f32 %v1642_v0  ;;  %v2664_v14 = vadd.f32 %v2617_v36, %v658_v5  ;;  %v2667_v15 = vadd.f32 %v2617_v36, %v690_v6  ;;  %v659_v16 = vmul.f32 %v2067_v12, %v2612_v34  ;;  %v409_v17 = vpop.f32.mrb[7].mxu0  ;;  %v537_v18 = vpop.f32.mrb[7].mxu1 }
  0xe9   :  { %2175 = vpow2.f32 %v1674_v1  ;;  %v2671_v19 = vadd.f32 %v2617_v36, %v656_v10  ;;  %v2674_v20 = vadd.f32 %v2617_v36, %v688_v11  ;;  %v691_v21 = vmul.f32 %v2099_v13, %v2612_v34 }
  0xea   :  { %2177 = vpow2.f32 %v1640_v4  ;;  %v1645_v22 = vmul.f32 -1.442695, %v2664_v14  ;;  %v1677_v23 = vmul.f32 -1.442695, %v2667_v15  ;;  %v2680_v24 = vadd.f32 %v2617_v36, %v659_v16 }
  0xeb   :  { %2179 = vpow2.f32 %v1672_v9  ;;  %v1643_v25 = vmul.f32 -1.442695, %v2671_v19  ;;  %v1675_v26 = vmul.f32 -1.442695, %v2674_v20  ;;  %v657_v28 = vmul.f32 %v2612_v34, %v409_v17 }
  0xec   :  { %2181 = vpow2.f32 %v1645_v22  ;;  %v1646_v27 = vmul.f32 -1.442695, %v2680_v24  ;;  %v2687_v32 = vadd.f32 %v2617_v36, %v691_v21  ;;  %v689_v39 = vmul.f32 %v2612_v34, %v537_v18 }
  0xed   :  { %2183 = vpow2.f32 %v1677_v23  ;;  %v2070_v29 = vpop.f32.mrb[8].mxu0  ;;  %v2102_v30 = vpop.f32.mrb[8].mxu1  ;;  %v2691_v49 = vadd.f32 %v2617_v36, %v657_v28 }
  0xee   :  { %v2166_v31 = vpop.eup %2165  ;;  %2185 = vpow2.f32 %v1643_v25  ;;  %v422_v33 = vpop.f32.mrb[9].mxu0  ;;  %v2694_v55 = vmul.f32 -1.442695, %v2687_v32  ;;  %v2697_v60 = vadd.f32 %v2617_v36, %v689_v39  ;;  %v662_v61 = vmul.f32 %v2070_v29, %v2612_v34 }
  0xef   :  { %v550_v35 = vpop.f32.mrb[9].mxu1  ;;  %v2168_v37 = vpop.eup %2167  ;;  %v981_v38 = vadd.f32 1.0, %v2166_v31  ;;  %2187 = vpow2.f32 %v1675_v26  ;;  %v694_v2 = vmul.f32 %v2102_v30, %v2612_v34  ;;  %v660_v3 = vmul.f32 %v2612_v34, %v422_v33 }
  0xf0   :  { %v2071_v40 = vpop.f32.mrb[10].mxu0  ;;  %v2103_v41 = vpop.f32.mrb[10].mxu1  ;;  %v1013_v43 = vadd.f32 1.0, %v2168_v37  ;;  %2189 = vpow2.f32 %v1646_v27  ;;  %v1644_v6 = vmul.f32 -1.442695, %v2691_v49  ;;  %v692_v7 = vmul.f32 %v2612_v34, %v550_v35 }
  0xf1   :  { %v2170_v42 = vpop.eup %2169  ;;  %v425_v44 = vpop.f32.mrb[11].mxu0  ;;  %2191 = vrcp.f32 %v981_v38  ;;  %v663_v12 = vmul.f32 %v2071_v40, %v2612_v34  ;;  %v695_v13 = vmul.f32 %v2103_v41, %v2612_v34  ;;  %v2709_v22 = vadd.f32 %v2617_v36, %v662_v61 }
  0xf2   :  { %v2172_v45 = vpop.eup %2171  ;;  %v979_v48 = vadd.f32 1.0, %v2170_v42  ;;  %v553_v50 = vpop.f32.mrb[11].mxu1  ;;  %2193 = vrcp.f32 %v1013_v43  ;;  %v661_v23 = vmul.f32 %v2612_v34, %v425_v44  ;;  %v2717_v29 = vadd.f32 %v2617_v36, %v694_v2 }
  0xf3   :  { %v2174_v51 = vpop.eup %2173  ;;  %v1011_v54 = vadd.f32 1.0, %v2172_v45  ;;  %v2720_v30 = vadd.f32 %v2617_v36, %v660_v3  ;;  %v1676_v38 = vmul.f32 -1.442695, %v2697_v60  ;;  %v2728_v39 = vadd.f32 %v2617_v36, %v692_v7 }
  0xf4   :  { %v2176_v56 = vpop.eup %2175  ;;  %2195 = vrcp.f32 %v979_v48  ;;  %v982_v57 = vadd.f32 1.0, %v2174_v51  ;;  %v2731_v42 = vadd.f32 %v2617_v36, %v663_v12  ;;  %v2734_v43 = vadd.f32 %v2617_v36, %v695_v13 }
  0xf5   :  { %v2178_v0 = vpop.eup %2177  ;;  %2197 = vrcp.f32 %v1011_v54  ;;  %v1014_v1 = vadd.f32 1.0, %v2176_v56  ;;  %v2074_v8 = vpop.f32.mrb[12].mxu0  ;;  %v2737_v48 = vadd.f32 %v2617_v36, %v661_v23  ;;  %v693_v51 = vmul.f32 %v2612_v34, %v553_v50 }
  0xf6   :  { %v2180_v4 = vpop.eup %2179  ;;  %2199 = vrcp.f32 %v982_v57  ;;  %v980_v5 = vadd.f32 1.0, %v2178_v0  ;;  %v2106_v9 = vpop.f32.mrb[12].mxu1  ;;  %v1649_v56 = vmul.f32 -1.442695, %v2709_v22  ;;  %v1681_v57 = vmul.f32 -1.442695, %v2717_v29 }
  0xf7   :  { %v2182_v10 = vpop.eup %2181  ;;  %2201 = vrcp.f32 %v1014_v1  ;;  %v1012_v11 = vadd.f32 1.0, %v2180_v4  ;;  %v438_v16 = vpop.f32.mrb[13].mxu0  ;;  %v1647_v61 = vmul.f32 -1.442695, %v2720_v30  ;;  %v1679_v1 = vmul.f32 -1.442695, %v2728_v39 }
  0xf8   :  { %v2706_v17 = vpop.f32.mrb[13].mxu1  ;;  %v2184_v18 = vpop.eup %2183  ;;  %2203 = vrcp.f32 %v980_v5  ;;  %v985_v21 = vadd.f32 1.0, %v2182_v10  ;;  %v666_v2 = vmul.f32 %v2074_v8, %v2612_v34  ;;  %v698_v3 = vmul.f32 %v2106_v9, %v2612_v34 }
  0xf9   :  { %v2712_v25 = vpop.f32.mrb[14].mxu0  ;;  %v2714_v26 = vpop.f32.mrb[14].mxu1  ;;  %2205 = vrcp.f32 %v1012_v11  ;;  %v1017_v28 = vadd.f32 1.0, %v2184_v18  ;;  %v1650_v7 = vmul.f32 -1.442695, %v2731_v42  ;;  %v2760_v18 = vadd.f32 %v2617_v36, %v693_v51 }
  0xfa   :  { %v2186_v27 = vpop.eup %2185  ;;  %v2722_v31 = vpop.f32.mrb[15].mxu0  ;;  %2207 = vrcp.f32 %v985_v21  ;;  %v1682_v10 = vmul.f32 -1.442695, %v2734_v43  ;;  %v1648_v9 = vmul.f32 -1.442695, %v2737_v48 }
  0xfb   :  { %v2724_v33 = vpop.f32.mrb[15].mxu1  ;;  %v2188_v35 = vpop.eup %2187  ;;  %v983_v37 = vadd.f32 1.0, %v2186_v27  ;;  %2209 = vrcp.f32 %v1017_v28 }
  0xfc   :  { %v2190_v40 = vpop.eup %2189  ;;  %v1015_v41 = vadd.f32 1.0, %v2188_v35  ;;  %v664_v35 = vmul.f32 %v2612_v34, %v438_v16 }
  0xfd   :  { %v2192_v44 = vpop.eup %2191  ;;  %2211 = vrcp.f32 %v983_v37  ;;  %v986_v45 = vadd.f32 1.0, %v2190_v40  ;;  %v2746_v4 = vpop.f32.mrb[16].mxu0 }
  0xfe   :  { %v2194_v54 = vpop.eup %2193  ;;  %2213 = vrcp.f32 %v1015_v41  ;;  %v2748_v5 = vpop.f32.mrb[16].mxu1  ;;  %v1173_v8 = vmul.f32 %v2192_v44, %v2624_v46  ;;  %v2775_v41 = vadd.f32 %v2617_v36, %v666_v2  ;;  %v2778_v44 = vadd.f32 %v2617_v36, %v698_v3 }
  0xff   :  { %v2196_v0 = vpop.eup %2195  ;;  %2215 = vrcp.f32 %v986_v45  ;;  %v2753_v11 = vpop.f32.mrb[17].mxu0  ;;  %v1205_v27 = vmul.f32 %v2194_v54, %v2627_v47  ;;  %v1680_v3 = vmul.f32 -1.442695, %v2760_v18 }
 0x100   :  { %v2198_v50 = vpop.eup %2197  ;;  %2217 = vpow2.f32 %v2694_v55  ;;  %v2755_v12 = vpop.f32.mrb[17].mxu1 }
 0x101   :  { %v2200_v13 = vpop.eup %2199  ;;  %2219 = vpow2.f32 %v1644_v6  ;;  %v2762_v21 = vpop.f32.mrb[18].mxu0  ;;  %v1203_v51 = vmul.f32 %v2198_v50, %v2635_v53 }
 0x102   :  { %v2764_v55 = vpop.f32.mrb[18].mxu1  ;;  %v2202_v23 = vpop.eup %2201  ;;  %v1174_v28 = vmul.f32 %v2200_v13, %v2642_v58  ;;  %2221 = vpow2.f32 %v1676_v38  ;;  %v1171_v58 = vmul.f32 %v2196_v0, %v2632_v52 }
 0x103   :  { %v2769_v37 = vpop.f32.mrb[19].mxu0  ;;  %v2771_v46 = vpop.f32.mrb[19].mxu1  ;;  %v1206_v40 = vmul.f32 %v2202_v23, %v2645_v59  ;;  %2223 = vpow2.f32 %v1649_v56 }
 0x104   :  { %v2204_v6 = vpop.eup %2203  ;;  %v1839_v38 = vpack.c.bf16 %v1174_v28, %v1173_v8  ;;  %2225 = vpow2.f32 %v1681_v57  ;;  %v696_v57 = vmul.f32 %v2612_v34, %v2706_v17  ;;  %v2800_v8 = vadd.f32 %v2617_v36, %v664_v35 }
 0x105   :  { %v2206_v47 = vpop.eup %2205  ;;  %v1172_v16 = vmul.f32 %v2204_v6, %v2650_v62  ;;  %v1919_v54 = vpack.c.bf16 %v1206_v40, %v1205_v27  ;;  %2227 = vpow2.f32 %v1647_v61  ;;  %v1653_v62 = vmul.f32 -1.442695, %v2775_v41  ;;  %v2788_v53 = vpop.f32.mrb[20].mxu0 }
 0x106   :  { %v2208_v45 = vpop.eup %2207  ;;  %v1204_v59 = vmul.f32 %v2206_v47, %v2653_v63  ;;  %1991 = vst [vmem:[#allocation2 + $0x8] sm:$0xff] %v1839_v38   ;;  %2229 = vpow2.f32 %v1679_v1  ;;  %v2790_v0 = vpop.f32.mrb[20].mxu1  ;;  %v1685_v61 = vmul.f32 -1.442695, %v2778_v44  ;;  %v667_v17 = vmul.f32 %v2712_v25, %v2612_v34 }
 0x107   :  { %v2210_v56 = vpop.eup %2209  ;;  %v1834_v2 = vpack.c.bf16 %v1172_v16, %v1171_v58  ;;  %2007 = vst [vmem:[#allocation2 + $0x88] sm:$0xff] %v1919_v54   ;;  %2231 = vpow2.f32 %v1650_v7  ;;  %v2795_v1 = vpop.f32.mrb[21].mxu0  ;;  %v1177_v28 = vmul.f32 %v2208_v45, %v2664_v14  ;;  %v699_v40 = vmul.f32 %v2714_v26, %v2612_v34 }
 0x108   :  { %v2212_v13 = vpop.eup %2211  ;;  %v1914_v52 = vpack.c.bf16 %v1204_v59, %v1203_v51  ;;  %2233 = vpow2.f32 %v1682_v10  ;;  %v2797_v50 = vpop.f32.mrb[21].mxu1  ;;  %v2817_v25 = vadd.f32 %v2617_v36, %v696_v57  ;;  %v2820_v45 = vadd.f32 %v2617_v36, %v667_v17 }
 0x109   :  { %v2792_v63 = vpop.eup %2213  ;;  %1835 = vst [vmem:[#allocation2] sm:$0xff] %v1834_v2   ;;  %2235 = vpow2.f32 %v1648_v9  ;;  %v2804_v23 = vpop.f32.mrb[22].mxu0  ;;  %v2823_v59 = vmul.f32 -1.442695, %v2800_v8  ;;  %v2826_v2 = vadd.f32 %v2617_v36, %v699_v40  ;;  %v665_v57 = vmul.f32 %v2612_v34, %v2722_v31 }
 0x10a   :  { %v2216_v7 = vpop.eup %2215  ;;  %2006 = vst [vmem:[#allocation2 + $0x80] sm:$0xff] %v1914_v52   ;;  %v2806_v27 = vpop.f32.mrb[22].mxu1  ;;  %2237 = vpow2.f32 %v1680_v3  ;;  %v2847_v31 = vmul.f32 %v2212_v13, %v2671_v19 }
 0x10b   :  { %v2218_v10 = vpop.eup %2217  ;;  %v1178_v6 = vmul.f32 %v2216_v7, %v2680_v24  ;;  %v2812_v9 = vpop.f32.mrb[23].mxu0  ;;  %2239 = vpow2.f32 %v1653_v62  ;;  %v2829_v62 = vmul.f32 -1.442695, %v2817_v25 }
 0x10c   :  { %v2814_v35 = vpop.f32.mrb[23].mxu1  ;;  %v2220_v47 = vpop.eup %2219  ;;  %v1018_v58 = vadd.f32 1.0, %v2218_v10  ;;  %2241 = vpow2.f32 %v1685_v61  ;;  %v2838_v10 = vmul.f32 %v2210_v56, %v2667_v15 }
 0x10d   :  { %v2222_v38 = vpop.eup %2221  ;;  %v1849_v16 = vpack.c.bf16 %v1178_v6, %v1177_v28  ;;  %v984_v51 = vadd.f32 1.0, %v2220_v47  ;;  %v2833_v61 = vpop.f32.mrb[24].mxu0  ;;  %v697_v6 = vmul.f32 %v2612_v34, %v2724_v33 }
 0x10e   :  { %v2224_v14 = vpop.eup %2223  ;;  %2243 = vrcp.f32 %v1018_v58  ;;  %v1016_v24 = vadd.f32 1.0, %v2222_v38  ;;  %v2835_v7 = vpop.f32.mrb[24].mxu1 }
 0x10f   :  { %v2226_v26 = vpop.eup %2225  ;;  %1993 = vst [vmem:[#allocation2 + $0x18] sm:$0xff] %v1849_v16   ;;  %2245 = vrcp.f32 %v984_v51  ;;  %v989_v54 = vadd.f32 1.0, %v2224_v14  ;;  %v2842_v40 = vpop.f32.mrb[25].mxu0  ;;  %v2850_v16 = vmul.f32 -1.442695, %v2820_v45 }
 0x110   :  { %v2228_v3 = vpop.eup %2227  ;;  %2247 = vrcp.f32 %v1016_v24  ;;  %v1021_v52 = vadd.f32 1.0, %v2226_v26  ;;  %v2844_v47 = vpop.f32.mrb[25].mxu1  ;;  %v2857_v14 = vmul.f32 -1.442695, %v2826_v2  ;;  %v670_v24 = vmul.f32 %v2746_v4, %v2612_v34 }
 0x111   :  { %v2230_v17 = vpop.eup %2229  ;;  %2249 = vrcp.f32 %v989_v54  ;;  %v987_v28 = vadd.f32 1.0, %v2228_v3  ;;  %v2852_v15 = vpop.f32.mrb[26].mxu0  ;;  %v2867_v54 = vmul.f32 %v2792_v63, %v2674_v20  ;;  %v702_v4 = vmul.f32 %v2748_v5, %v2612_v34 }
 0x112   :  { %v2232_v58 = vpop.eup %2231  ;;  %2251 = vrcp.f32 %v1021_v52  ;;  %v1019_v38 = vadd.f32 1.0, %v2230_v17  ;;  %v2854_v56 = vpop.f32.mrb[26].mxu1  ;;  %v2870_v52 = vadd.f32 %v2617_v36, %v665_v57  ;;  %v668_v20 = vmul.f32 %v2612_v34, %v2753_v11 }
 0x113   :  { %v2234_v51 = vpop.eup %2233  ;;  %2253 = vrcp.f32 %v987_v28  ;;  %v990_v33 = vadd.f32 1.0, %v2232_v58  ;;  %v2861_v19 = vpop.f32.mrb[27].mxu0  ;;  %v2873_v58 = vadd.f32 %v2617_v36, %v697_v6  ;;  %v700_v63 = vmul.f32 %v2612_v34, %v2755_v12 }
 0x114   :  { %3154 = vst [vmem:[#allocation5_spill] sm:$0xff] %v2861_v19  ;;  %v2863_v13 = vpop.f32.mrb[27].mxu1  ;;  %v2236_v26 = vpop.eup %2235  ;;  %2255 = vrcp.f32 %v1019_v38  ;;  %v1022_v3 = vadd.f32 1.0, %v2234_v51  ;;  %v2882_v51 = vadd.f32 %v2617_v36, %v670_v24  ;;  %v671_v6 = vmul.f32 %v2762_v21, %v2612_v34 }
 0x115   :  { %3155 = vst [vmem:[#allocation6_spill] sm:$0xff] %v2863_v13  ;;  %v2238_v17 = vpop.eup %2237  ;;  %2257 = vrcp.f32 %v990_v33  ;;  %v988_v28 = vadd.f32 1.0, %v2236_v26  ;;  %v1652_v26 = vmul.f32 -1.442695, %v2870_v52  ;;  %v703_v11 = vmul.f32 %v2764_v55, %v2612_v34  ;;  %v2891_v12 = vpop.f32.mrb[28].mxu1 }
 0x116   :  { %v2240_v13 = vpop.eup %2239  ;;  %2259 = vrcp.f32 %v1022_v3  ;;  %v1020_v19 = vadd.f32 1.0, %v2238_v17  ;;  %v2889_v3 = vpop.f32.mrb[28].mxu0  ;;  %3156 = vst [vmem:[#allocation7_spill] sm:$0xff] %v2891_v12  ;;  %v2895_v24 = vadd.f32 %v2617_v36, %v702_v4  ;;  %v669_v21 = vmul.f32 %v2612_v34, %v2769_v37 }
 0x117   :  { %v2242_v57 = vpop.eup %2241  ;;  %2261 = vrcp.f32 %v988_v28  ;;  %v993_v38 = vadd.f32 1.0, %v2240_v13  ;;  %v2901_v28 = vpop.f32.mrb[29].mxu1  ;;  %v2905_v12 = vadd.f32 %v2617_v36, %v668_v20 }
 0x118   :  { %v2244_v33 = vpop.eup %2243  ;;  %2263 = vrcp.f32 %v1020_v19  ;;  %v1025_v5 = vadd.f32 1.0, %v2242_v57  ;;  %v2899_v19 = vpop.f32.mrb[29].mxu0 }
 0x119   :  { %v2246_v17 = vpop.eup %2245  ;;  %v1210_v13 = vmul.f32 %v2244_v33, %v2687_v32  ;;  %2265 = vrcp.f32 %v993_v38  ;;  %3157 = vst [vmem:[#allocation8_spill] sm:$0xff] %v2899_v19  ;;  %v2908_v32 = vadd.f32 %v2617_v36, %v700_v63  ;;  %v2910_v38 = vpop.f32.mrb[30].mxu0 }
 0x11a   :  { %v2248_v57 = vpop.eup %2247  ;;  %v1176_v55 = vmul.f32 %v2246_v17, %v2691_v49  ;;  %2267 = vrcp.f32 %v1025_v5  ;;  %3159 = vst [vmem:[#allocation10_spill] sm:$0xff] %v2910_v38  ;;  %v2912_v4 = vpop.f32.mrb[30].mxu1  ;;  %v2918_v49 = vadd.f32 %v2617_v36, %v671_v6  ;;  %v1657_v6 = vmul.f32 -1.442695, %v2882_v51 }
 0x11b   :  { %3158 = vst [vmem:[#allocation9_spill] sm:$0xff] %v2908_v32  ;;  %3160 = vst [vmem:[#allocation11_spill] sm:$0xff] %v2912_v4  ;;  %v2250_v33 = vpop.eup %2249  ;;  %v1929_v37 = vpack.c.bf16 %v1210_v13, %v2838_v10  ;;  %v1208_v19 = vmul.f32 %v2248_v57, %v2697_v60  ;;  %2269 = vpow2.f32 %v2823_v59  ;;  %v2920_v5 = vpop.f32.mrb[31].mxu0  ;;  %v1684_v4 = vmul.f32 -1.442695, %v2873_v58 }
 0x11c   :  { %3161 = vst [vmem:[#allocation12_spill] sm:$0xff] %v2920_v5  ;;  %v2922_v20 = vpop.f32.mrb[31].mxu1  ;;  %v2252_v63 = vpop.eup %2251  ;;  %v1844_v17 = vpack.c.bf16 %v1176_v55, %v2847_v31  ;;  %2271 = vpow2.f32 %v2829_v62  ;;  %v2928_v10 = vadd.f32 %v2617_v36, %v703_v11  ;;  %v2934_v13 = vadd.f32 %v2617_v36, %v669_v21 }
 0x11d   :  { %3162 = vst [vmem:[#allocation13_spill] sm:$0xff] %v2922_v20  ;;  %v2254_v60 = vpop.eup %2253  ;;  %2009 = vst [vmem:[#allocation2 + $0x98] sm:$0xff] %v1929_v37   ;;  %v1924_v59 = vpack.c.bf16 %v1208_v19, %v2867_v54  ;;  %2273 = vpow2.f32 %v2850_v16  ;;  %v1689_v62 = vmul.f32 -1.442695, %v2895_v24  ;;  %v1655_v11 = vmul.f32 -1.442695, %v2905_v12 }
 0x11e   :  { %v2256_v57 = vpop.eup %2255  ;;  %1992 = vst [vmem:[#allocation2 + $0x10] sm:$0xff] %v1844_v17   ;;  %2275 = vpow2.f32 %v2857_v14  ;;  %v1687_v54 = vmul.f32 -1.442695, %v2908_v32  ;;  %v1658_v16 = vmul.f32 -1.442695, %v2918_v49  ;;  %v1181_v55 = vmul.f32 %v2250_v33, %v2709_v22 }
 0x11f   :  { %v2258_v31 = vpop.eup %2257  ;;  %2008 = vst [vmem:[#allocation2 + $0x90] sm:$0xff] %v1924_v59   ;;  %2277 = vpow2.f32 %v1652_v26  ;;  %v1690_v37 = vmul.f32 -1.442695, %v2928_v10  ;;  %v1213_v17 = vmul.f32 %v2252_v63, %v2717_v29  ;;  %v1656_v26 = vmul.f32 -1.442695, %v2934_v13 }
 0x120   :  { %v2260_v19 = vpop.eup %2259  ;;  %v1182_v21 = vmul.f32 %v2258_v31, %v2731_v42  ;;  %2279 = vpow2.f32 %v1684_v4  ;;  %v1179_v32 = vmul.f32 %v2254_v60, %v2720_v30  ;;  %v1211_v42 = vmul.f32 %v2256_v57, %v2728_v39 }
 0x121   :  { %v2262_v14 = vpop.eup %2261  ;;  %v1214_v59 = vmul.f32 %v2260_v19, %v2734_v43  ;;  %2281 = vpow2.f32 %v1657_v6  ;;  %v701_v30 = vmul.f32 %v2612_v34, %v2771_v46 }
 0x122   :  { %v2264_v20 = vpop.eup %2263  ;;  %v1859_v5 = vpack.c.bf16 %v1182_v21, %v1181_v55  ;;  %v1180_v38 = vmul.f32 %v2262_v14, %v2737_v48  ;;  %2283 = vpow2.f32 %v1689_v62  ;;  %v674_v48 = vmul.f32 %v2788_v53, %v2612_v34 }
 0x123   :  { %v2949_v22 = vpop.eup %2265  ;;  %v1939_v4 = vpack.c.bf16 %v1214_v59, %v1213_v17  ;;  %v1212_v33 = vmul.f32 %v2264_v20, %v2760_v18  ;;  %2285 = vpow2.f32 %v1655_v11  ;;  %v706_v18 = vmul.f32 %v2790_v0, %v2612_v34 }
 0x124   :  { %v2953_v29 = vpop.eup %2267  ;;  %1995 = vst [vmem:[#allocation2 + $0x28] sm:$0xff] %v1859_v5   ;;  %v1854_v43 = vpack.c.bf16 %v1180_v38, %v1179_v32  ;;  %2287 = vpow2.f32 %v1687_v54  ;;  %v672_v32 = vmul.f32 %v2612_v34, %v2795_v1  ;;  %v2964_v20 = vadd.f32 %v2617_v36, %v701_v30 }
 0x125   :  { %v2270_v63 = vpop.eup %2269  ;;  %2011 = vst [vmem:[#allocation2 + $0xa8] sm:$0xff] %v1939_v4   ;;  %v1934_v60 = vpack.c.bf16 %v1212_v33, %v1211_v42  ;;  %2289 = vpow2.f32 %v1658_v16  ;;  %v2967_v57 = vadd.f32 %v2617_v36, %v674_v48  ;;  %v704_v0 = vmul.f32 %v2612_v34, %v2797_v50 }
 0x126   :  { %v2272_v39 = vpop.eup %2271  ;;  %1994 = vst [vmem:[#allocation2 + $0x20] sm:$0xff] %v1854_v43   ;;  %v991_v6 = vadd.f32 1.0, %v2270_v63  ;;  %2291 = vpow2.f32 %v1690_v37  ;;  %v2972_v54 = vadd.f32 %v2617_v36, %v706_v18  ;;  %v2975_v16 = vadd.f32 %v2617_v36, %v672_v32 }
 0x127   :  { %v2274_v38 = vpop.eup %2273  ;;  %2010 = vst [vmem:[#allocation2 + $0xa0] sm:$0xff] %v1934_v60   ;;  %v1023_v46 = vadd.f32 1.0, %v2272_v39  ;;  %2293 = vpow2.f32 %v1656_v26  ;;  %v675_v21 = vmul.f32 %v2804_v23, %v2612_v34  ;;  %v707_v37 = vmul.f32 %v2806_v27, %v2612_v34 }
 0x128   :  { %v2276_v5 = vpop.eup %2275  ;;  %2295 = vrcp.f32 %v991_v6  ;;  %v994_v53 = vadd.f32 1.0, %v2274_v38  ;;  %v1688_v17 = vmul.f32 -1.442695, %v2964_v20  ;;  %v1661_v59 = vmul.f32 -1.442695, %v2967_v57 }
 0x129   :  { %v2278_v62 = vpop.eup %2277  ;;  %2297 = vrcp.f32 %v1023_v46  ;;  %v1026_v31 = vadd.f32 1.0, %v2276_v5  ;;  %v2984_v4 = vadd.f32 %v2617_v36, %v704_v0  ;;  %v673_v33 = vmul.f32 %v2612_v34, %v2812_v9 }
 0x12a   :  { %v2280_v1 = vpop.eup %2279  ;;  %2299 = vrcp.f32 %v994_v53  ;;  %v992_v11 = vadd.f32 1.0, %v2278_v62  ;;  %v1693_v27 = vmul.f32 -1.442695, %v2972_v54  ;;  %v1659_v30 = vmul.f32 -1.442695, %v2975_v16 }
 0x12b   :  { %v2282_v19 = vpop.eup %2281  ;;  %2301 = vrcp.f32 %v1026_v31  ;;  %v1024_v55 = vadd.f32 1.0, %v2280_v1  ;;  %v2991_v60 = vadd.f32 %v2617_v36, %v675_v21  ;;  %v2994_v39 = vadd.f32 %v2617_v36, %v707_v37 }
 0x12c   :  { %v2284_v14 = vpop.eup %2283  ;;  %2303 = vrcp.f32 %v992_v11  ;;  %v997_v50 = vadd.f32 1.0, %v2282_v19  ;;  %v705_v9 = vmul.f32 %v2612_v34, %v2814_v35  ;;  %v678_v32 = vmul.f32 %v2833_v61, %v2612_v34 }
 0x12d   :  { %v2286_v26 = vpop.eup %2285  ;;  %2305 = vrcp.f32 %v1024_v55  ;;  %v1029_v42 = vadd.f32 1.0, %v2284_v14  ;;  %v1691_v5 = vmul.f32 -1.442695, %v2984_v4  ;;  %v3002_v53 = vadd.f32 %v2617_v36, %v673_v33 }
 0x12e   :  { %v2288_v23 = vpop.eup %2287  ;;  %2307 = vrcp.f32 %v997_v50  ;;  %v995_v43 = vadd.f32 1.0, %v2286_v26  ;;  %v710_v0 = vmul.f32 %v2835_v7, %v2612_v34  ;;  %v676_v35 = vmul.f32 %v2612_v34, %v2842_v40 }
 0x12f   :  { %v2290_v48 = vpop.eup %2289  ;;  %2309 = vrcp.f32 %v1029_v42  ;;  %v1027_v63 = vadd.f32 1.0, %v2288_v23  ;;  %v1185_v61 = vmul.f32 %v2949_v22, %v2775_v41  ;;  %v1662_v11 = vmul.f32 -1.442695, %v2991_v60 }
 0x130   :  { %v2292_v6 = vpop.eup %2291  ;;  %2311 = vrcp.f32 %v995_v43  ;;  %v998_v18 = vadd.f32 1.0, %v2290_v48  ;;  %v1694_v19 = vmul.f32 -1.442695, %v2994_v39  ;;  %v1217_v21 = vmul.f32 %v2953_v29, %v2778_v44 }
 0x131   :  { %v2294_v38 = vpop.eup %2293  ;;  %2313 = vrcp.f32 %v1027_v63  ;;  %v1030_v46 = vadd.f32 1.0, %v2292_v6  ;;  %v3015_v37 = vadd.f32 %v2617_v36, %v705_v9  ;;  %v3018_v7 = vadd.f32 %v2617_v36, %v678_v32 }
 0x132   :  { %v2296_v62 = vpop.eup %2295  ;;  %2315 = vrcp.f32 %v998_v18  ;;  %v996_v31 = vadd.f32 1.0, %v2294_v38  ;;  %v1660_v41 = vmul.f32 -1.442695, %v3002_v53  ;;  %v708_v22 = vmul.f32 %v2612_v34, %v2844_v47 }
 0x133   :  { %v2298_v1 = vpop.eup %2297  ;;  %2317 = vrcp.f32 %v1030_v46  ;;  %v3026_v44 = vadd.f32 %v2617_v36, %v710_v0  ;;  %v3029_v29 = vadd.f32 %v2617_v36, %v676_v35  ;;  %v1183_v33 = vmul.f32 %v2296_v62, %v2800_v8 }
 0x134   :  { %v2300_v55 = vpop.eup %2299  ;;  %2319 = vrcp.f32 %v996_v31  ;;  %v1215_v47 = vmul.f32 %v2298_v1, %v2817_v25  ;;  %v1692_v63 = vmul.f32 -1.442695, %v3015_v37  ;;  %v3037_v6 = vadd.f32 %v2617_v36, %v708_v22 }
 0x135   :  { %v2302_v40 = vpop.eup %2301  ;;  %v1186_v14 = vmul.f32 %v2300_v55, %v2820_v45  ;;  %2321 = vpow2.f32 %v1688_v17  ;;  %v1663_v18 = vmul.f32 -1.442695, %v3029_v29  ;;  %v679_v9 = vmul.f32 %v2852_v15, %v2612_v34 }
 0x136   :  { %v2304_v50 = vpop.eup %2303  ;;  %v1218_v26 = vmul.f32 %v2302_v40, %v2826_v2  ;;  %2323 = vpow2.f32 %v1661_v59  ;;  %v711_v32 = vmul.f32 %v2854_v56, %v2612_v34  ;;  %v1695_v62 = vmul.f32 -1.442695, %v3037_v6 }
 0x137   :  { %v2306_v42 = vpop.eup %2305  ;;  %v1869_v45 = vpack.c.bf16 %v1186_v14, %v1185_v61  ;;  %v1184_v17 = vmul.f32 %v2304_v50, %v2870_v52  ;;  %2325 = vpow2.f32 %v1693_v27  ;;  %v1665_v27 = vmul.f32 -1.442695, %v3018_v7  ;;  %v2421_v14 = vld [vmem:[%s3150_s2] ss:$0 sm:$0xff] }
 0x138   :  { %v2308_v23 = vpop.eup %2307  ;;  %v1949_v43 = vpack.c.bf16 %v1218_v26, %v1217_v21  ;;  %v1216_v2 = vmul.f32 %v2306_v42, %v2873_v58  ;;  %2327 = vpow2.f32 %v1659_v30  ;;  %v1697_v58 = vmul.f32 -1.442695, %v3026_v44 }
 0x139   :  { %v2310_v59 = vpop.eup %2309  ;;  %1997 = vst [vmem:[#allocation2 + $0x38] sm:$0xff] %v1869_v45   ;;  %v1864_v48 = vpack.c.bf16 %v1184_v17, %v1183_v33  ;;  %2329 = vpow2.f32 %v1691_v5  ;;  %v1189_v46 = vmul.f32 %v2308_v23, %v2882_v51 }
 0x13a   :  { %v2312_v8 = vpop.eup %2311  ;;  %2013 = vst [vmem:[#allocation2 + $0xb8] sm:$0xff] %v1949_v43   ;;  %v1944_v52 = vpack.c.bf16 %v1216_v2, %v1215_v47  ;;  %2331 = vpow2.f32 %v1662_v11  ;;  %v1221_v0 = vmul.f32 %v2310_v59, %v2895_v24  ;;  %v3164_v47 = vld [vmem:[#allocation6_spill] sm:$0xff]  ;;  %v682_v2 = vmul.f32 %v2421_v14, %v2889_v3 }
 0x13b   :  { %v3040_v25 = vpop.eup %2313  ;;  %1996 = vst [vmem:[#allocation2 + $0x30] sm:$0xff] %v1864_v48   ;;  %2333 = vpow2.f32 %v1694_v19  ;;  %v1187_v15 = vmul.f32 %v2312_v8, %v2905_v12  ;;  %v709_v43 = vmul.f32 %v2421_v14, %v3164_v47 }
 0x13c   :  { %v2316_v30 = vpop.eup %2315  ;;  %2012 = vst [vmem:[#allocation2 + $0xb0] sm:$0xff] %v1944_v52   ;;  %2335 = vpow2.f32 %v1660_v41  ;;  %v3163_v41 = vld [vmem:[#allocation5_spill] sm:$0xff]  ;;  %v3165_v52 = vld [vmem:[#allocation7_spill] sm:$0xff] }
 0x13d   :  { %v2318_v38 = vpop.eup %2317  ;;  %v1190_v5 = vmul.f32 %v2316_v30, %v2918_v49  ;;  %2337 = vpow2.f32 %v1692_v63  ;;  %v3056_v49 = vadd.f32 %v2617_v36, %v679_v9  ;;  %v677_v22 = vmul.f32 %v2421_v14, %v3163_v41  ;;  %v2422_v63 = vld [vmem:[%s3151_s3] ss:$0 sm:$0xff]  ;;  %s2447_s3 = smov [#allocation2]  }
 0x13e   :  { %v2320_v31 = vpop.eup %2319  ;;  %v1222_v35 = vmul.f32 %v2318_v38, %v2928_v10  ;;  %2339 = vpow2.f32 %v1665_v27  ;;  %v3059_v10 = vadd.f32 %v2617_v36, %v711_v32  ;;  %v714_v27 = vmul.f32 %v2421_v14, %v3165_v52  ;;  %s1560_s8 = sshll.u32 %s2447_s3, 4  ;;  %s1561_s8 = int_to_ptr.vmem [resolvable:$true] %s1560_s8 }
 0x13f   :  { %v2322_v1 = vpop.eup %2321  ;;  %v1879_v61 = vpack.c.bf16 %v1190_v5, %v1189_v46  ;;  %v1188_v34 = vmul.f32 %v2320_v31, %v2934_v13  ;;  %2341 = vpow2.f32 %v1697_v58  ;;  %v1666_v33 = vmul.f32 -1.442695, %v3056_v49  ;;  %v3167_v46 = vld [vmem:[#allocation10_spill] sm:$0xff]  ;;  %s2423_s9 = scalar_lea.vmem %s1561_s8, 4096  ;;  %p2428_p1 = scmp.lt.s32.totalorder %s1561_s8, %s1561_s8 }
 0x140   :  { %v2324_v56 = vpop.eup %2323  ;;  %v1959_v51 = vpack.c.bf16 %v1222_v35, %v1221_v0  ;;  %v1028_v11 = vadd.f32 1.0, %v2322_v1  ;;  %2343 = vpow2.f32 %v1663_v18  ;;  %v1698_v45 = vmul.f32 -1.442695, %v3059_v10  ;;  %v3166_v18 = vld [vmem:[#allocation8_spill] sm:$0xff]  ;;  %p2424_p0 = scmp.ne.s32.totalorder %s1561_s8, %s2423_s9  ;;  %p2429_p2 = scmp.lt.s32.totalorder %s2423_s9, %s2423_s9 }
 0x141   :  { %v2326_v19 = vpop.eup %2325  ;;  %1999 = vst [vmem:[#allocation2 + $0x48] sm:$0xff] %v1879_v61   ;;  %v1874_v24 = vpack.c.bf16 %v1188_v34, %v1187_v15  ;;  %v1001_v55 = vadd.f32 1.0, %v2324_v56  ;;  %2345 = vpow2.f32 %v1695_v62  ;;  %v3072_v8 = vadd.f32 %v2422_v63, %v677_v22  ;;  %v3168_v62 = vld [vmem:[#allocation11_spill] sm:$0xff] }
 0x142   :  { %v2328_v12 = vpop.eup %2327  ;;  %2015 = vst [vmem:[#allocation2 + $0xc8] sm:$0xff] %v1959_v51   ;;  %2347 = vrcp.f32 %v1028_v11  ;;  %v1033_v13 = vadd.f32 1.0, %v2326_v19  ;;  %v680_v9 = vmul.f32 %v2421_v14, %v3166_v18  ;;  %v712_v32 = vmul.f32 %v2421_v14, %v2901_v28  ;;  %v3169_v28 = vld [vmem:[#allocation12_spill] sm:$0xff]  ;;  %p2430_p3 = por %p2429_p2, %p2428_p1 }
 0x143   :  { %v2330_v21 = vpop.eup %2329  ;;  %1998 = vst [vmem:[#allocation2 + $0x40] sm:$0xff] %v1874_v24   ;;  %2349 = vrcp.f32 %v1001_v55  ;;  %v999_v40 = vadd.f32 1.0, %v2328_v12  ;;  %v683_v5 = vmul.f32 %v2421_v14, %v3167_v46  ;;  %v715_v31 = vmul.f32 %v2421_v14, %v3168_v62  ;;  %v3170_v24 = vld [vmem:[#allocation9_spill] sm:$0xff] }
 0x144   :  { %v2332_v50 = vpop.eup %2331  ;;  %2351 = vrcp.f32 %v1033_v13  ;;  %v1031_v26 = vadd.f32 1.0, %v2330_v21  ;;  %v3079_v1 = vadd.f32 %v2422_v63, %v709_v43  ;;  %v3081_v15 = vadd.f32 %v2422_v63, %v682_v2  ;;  %p2431_p4 = pnand %p2430_p3, %p2424_p0 }
 0x145   :  { %v2334_v42 = vpop.eup %2333  ;;  %2353 = vrcp.f32 %v999_v40  ;;  %v1002_v36 = vadd.f32 1.0, %v2332_v50  ;;  %v1664_v56 = vmul.f32 -1.442695, %v3072_v8  ;;  %v3084_v51 = vadd.f32 %v2422_v63, %v714_v27 }
 0x146   :  { %v2336_v17 = vpop.eup %2335  ;;  %2355 = vrcp.f32 %v1031_v26  ;;  %v1034_v23 = vadd.f32 1.0, %v2334_v42  ;;  %v681_v11 = vmul.f32 %v2421_v14, %v3169_v28  ;;  %v1219_v55 = vmul.f32 %v3040_v25, %v3170_v24  ;;  %v3171_v42 = vld [vmem:[#allocation13_spill] sm:$0xff] }
 0x147   :  { %v2338_v59 = vpop.eup %2337  ;;  %2357 = vrcp.f32 %v1002_v36  ;;  %v1000_v48 = vadd.f32 1.0, %v2336_v17  ;;  %v3089_v12 = vadd.f32 %v2422_v63, %v680_v9  ;;  %v3091_v13 = vadd.f32 %v2422_v63, %v712_v32 }
 0x148   :  { %v2340_v58 = vpop.eup %2339  ;;  %2359 = vrcp.f32 %v1034_v23  ;;  %v1032_v30 = vadd.f32 1.0, %v2338_v59  ;;  %v3094_v41 = vadd.f32 %v2422_v63, %v683_v5  ;;  %v3096_v22 = vadd.f32 %v2422_v63, %v715_v31 }
 0x149   :  { %v2342_v38 = vpop.eup %2341  ;;  %2361 = vrcp.f32 %v1000_v48  ;;  %v1005_v3 = vadd.f32 1.0, %v2340_v58  ;;  %v1696_v26 = vmul.f32 -1.442695, %v3079_v1  ;;  %v713_v36 = vmul.f32 %v2421_v14, %v3171_v42 }
 0x14a   :  { %v2344_v0 = vpop.eup %2343  ;;  %2363 = vrcp.f32 %v1032_v30  ;;  %v1037_v35 = vadd.f32 1.0, %v2342_v38  ;;  %v1669_v23 = vmul.f32 -1.442695, %v3081_v15  ;;  %v3101_v47 = vadd.f32 %v2422_v63, %v681_v11 }
 0x14b   :  { %v2346_v61 = vpop.eup %2345  ;;  %v1003_v34 = vadd.f32 1.0, %v2344_v0  ;;  %2365 = vrcp.f32 %v1005_v3  ;;  %v1667_v2 = vmul.f32 -1.442695, %v3089_v12  ;;  %v1699_v48 = vmul.f32 -1.442695, %v3091_v13 }
 0x14c   :  { %v2348_v19 = vpop.eup %2347  ;;  %2367 = vrcp.f32 %v1037_v35  ;;  %v1670_v14 = vmul.f32 -1.442695, %v3094_v41  ;;  %v1702_v52 = vmul.f32 -1.442695, %v3096_v22  ;;  %v1668_v32 = vmul.f32 -1.442695, %v3101_v47 }
 0x14d   :  { %v2350_v21 = vpop.eup %2349  ;;  %v1220_v40 = vmul.f32 %v2348_v19, %v2964_v20  ;;  %2369 = vrcp.f32 %v1003_v34  ;;  %v1701_v20 = vmul.f32 -1.442695, %v3084_v51 }
 0x14e   :  { %v2352_v50 = vpop.eup %2351  ;;  %2371 = vpow2.f32 %v1666_v33  ;;  %v1193_v27 = vmul.f32 %v2350_v21, %v2967_v57 }
 0x14f   :  { %v2354_v25 = vpop.eup %2353  ;;  %v1954_v17 = vpack.c.bf16 %v1220_v40, %v1219_v55  ;;  %2373 = vpow2.f32 %v1698_v45  ;;  %v3110_v45 = vadd.f32 %v2422_v63, %v713_v36  ;;  %v1225_v18 = vmul.f32 %v2352_v50, %v2972_v54 }
 0x150   :  { %v2356_v43 = vpop.eup %2355  ;;  %2375 = vpow2.f32 %v1664_v56  ;;  %v1191_v3 = vmul.f32 %v2354_v25, %v2975_v16  ;;  %v1035_v16 = vadd.f32 1.0, %v2346_v61 }
 0x151   :  { %v2358_v59 = vpop.eup %2357  ;;  %2014 = vst [vmem:[#allocation2 + $0xc0] sm:$0xff] %v1954_v17   ;;  %2377 = vpow2.f32 %v1696_v26  ;;  %v1223_v57 = vmul.f32 %v2356_v43, %v2984_v4 }
 0x152   :  { %v2360_v33 = vpop.eup %2359  ;;  %v1194_v58 = vmul.f32 %v2358_v59, %v2991_v60  ;;  %2379 = vpow2.f32 %v1669_v23 }
 0x153   :  { %v2362_v30 = vpop.eup %2361  ;;  %v1226_v9 = vmul.f32 %v2360_v33, %v2994_v39  ;;  %2381 = vpow2.f32 %v1701_v20  ;;  %v1700_v39 = vmul.f32 -1.442695, %v3110_v45 }
 0x154   :  { %v2364_v38 = vpop.eup %2363  ;;  %v1889_v46 = vpack.c.bf16 %v1194_v58, %v1193_v27  ;;  %v1192_v5 = vmul.f32 %v2362_v30, %v3002_v53  ;;  %2383 = vpow2.f32 %v1667_v2 }
 0x155   :  { %v1969_v60 = vpack.c.bf16 %v1226_v9, %v1225_v18  ;;  %v1224_v63 = vmul.f32 %v2364_v38, %v3015_v37  ;;  %v2366_v62 = vpop.eup %2365  ;;  %2385 = vpow2.f32 %v1699_v48 }
 0x156   :  { %2001 = vst [vmem:[#allocation2 + $0x58] sm:$0xff] %v1889_v46   ;;  %v1884_v54 = vpack.c.bf16 %v1192_v5, %v1191_v3  ;;  %v2368_v31 = vpop.eup %2367  ;;  %2387 = vpow2.f32 %v1670_v14  ;;  %v1197_v33 = vmul.f32 %v2366_v62, %v3018_v7 }
 0x157   :  { %2017 = vst [vmem:[#allocation2 + $0xd8] sm:$0xff] %v1969_v60   ;;  %v1964_v0 = vpack.c.bf16 %v1224_v63, %v1223_v57  ;;  %v2370_v35 = vpop.eup %2369  ;;  %2389 = vpow2.f32 %v1702_v52  ;;  %v1229_v30 = vmul.f32 %v2368_v31, %v3026_v44 }
 0x158   :  { %2000 = vst [vmem:[#allocation2 + $0x50] sm:$0xff] %v1884_v54   ;;  %v2372_v53 = vpop.eup %2371  ;;  %2391 = vpow2.f32 %v1668_v32  ;;  %v1195_v32 = vmul.f32 %v2370_v35, %v3029_v29 }
 0x159   :  { %2016 = vst [vmem:[#allocation2 + $0xd0] sm:$0xff] %v1964_v0   ;;  %v2374_v4 = vpop.eup %2373  ;;  %v1006_v37 = vadd.f32 1.0, %v2372_v53  ;;  %2393 = vpow2.f32 %v1700_v39 }
 0x15a   :  { %v2376_v34 = vpop.eup %2375  ;;  %2395 = vrcp.f32 %v1035_v16  ;;  %v1038_v56 = vadd.f32 1.0, %v2374_v4 }
 0x15b   :  { %v2378_v28 = vpop.eup %2377  ;;  %2397 = vrcp.f32 %v1006_v37  ;;  %v1004_v11 = vadd.f32 1.0, %v2376_v34 }
 0x15c   :  { %v2380_v19 = vpop.eup %2379  ;;  %2399 = vrcp.f32 %v1038_v56  ;;  %v1036_v24 = vadd.f32 1.0, %v2378_v28 }
 0x15d   :  { %v2382_v61 = vpop.eup %2381  ;;  %2401 = vrcp.f32 %v1004_v11  ;;  %v1009_v55 = vadd.f32 1.0, %v2380_v19 }
 0x15e   :  { %v2384_v21 = vpop.eup %2383  ;;  %2403 = vrcp.f32 %v1036_v24  ;;  %v1041_v40 = vadd.f32 1.0, %v2382_v61 }
 0x15f   :  { %v2386_v50 = vpop.eup %2385  ;;  %2405 = vrcp.f32 %v1009_v55  ;;  %v1007_v26 = vadd.f32 1.0, %v2384_v21 }
 0x160   :  { %v2388_v42 = vpop.eup %2387  ;;  %2407 = vrcp.f32 %v1041_v40  ;;  %v1039_v36 = vadd.f32 1.0, %v2386_v50 }
 0x161   :  { %v2390_v25 = vpop.eup %2389  ;;  %2409 = vrcp.f32 %v1007_v26  ;;  %v1010_v17 = vadd.f32 1.0, %v2388_v42 }
 0x162   :  { %v2392_v23 = vpop.eup %2391  ;;  %2411 = vrcp.f32 %v1039_v36  ;;  %v1042_v43 = vadd.f32 1.0, %v2390_v25 }
 0x163   :  { %v2394_v20 = vpop.eup %2393  ;;  %2413 = vrcp.f32 %v1010_v17  ;;  %v1008_v2 = vadd.f32 1.0, %v2392_v23 }
 0x164   :  { %v2396_v59 = vpop.eup %2395  ;;  %2415 = vrcp.f32 %v1042_v43  ;;  %v1040_v48 = vadd.f32 1.0, %v2394_v20 }
 0x165   :  { %v2398_v14 = vpop.eup %2397  ;;  %2417 = vrcp.f32 %v1008_v2  ;;  %v1227_v5 = vmul.f32 %v2396_v59, %v3037_v6 }
 0x166   :  { %v2400_v52 = vpop.eup %2399  ;;  %v1198_v27 = vmul.f32 %v2398_v14, %v3056_v49  ;;  %2419 = vrcp.f32 %v1040_v48 }
 0x167   :  { %v2402_v58 = vpop.eup %2401  ;;  %v1230_v18 = vmul.f32 %v2400_v52, %v3059_v10 }
 0x168   :  { %v2404_v9 = vpop.eup %2403  ;;  %v1899_v38 = vpack.c.bf16 %v1198_v27, %v1197_v33  ;;  %v1196_v3 = vmul.f32 %v2402_v58, %v3072_v8 }
 0x169   :  { %v2406_v46 = vpop.eup %2405  ;;  %v1979_v57 = vpack.c.bf16 %v1230_v18, %v1229_v30  ;;  %v1228_v7 = vmul.f32 %v2404_v9, %v3079_v1 }
 0x16a   :  { %v2408_v60 = vpop.eup %2407  ;;  %2003 = vst [vmem:[#allocation2 + $0x68] sm:$0xff] %v1899_v38   ;;  %v1894_v49 = vpack.c.bf16 %v1196_v3, %v1195_v32  ;;  %v1201_v54 = vmul.f32 %v2406_v46, %v3081_v15 }
 0x16b   :  { %v2410_v63 = vpop.eup %2409  ;;  %2019 = vst [vmem:[#allocation2 + $0xe8] sm:$0xff] %v1979_v57   ;;  %v1974_v44 = vpack.c.bf16 %v1228_v7, %v1227_v5  ;;  %v1233_v6 = vmul.f32 %v2408_v60, %v3084_v51 }
 0x16c   :  { %v2412_v62 = vpop.eup %2411  ;;  %2002 = vst [vmem:[#allocation2 + $0x60] sm:$0xff] %v1894_v49   ;;  %v1199_v0 = vmul.f32 %v2410_v63, %v3089_v12 }
 0x16d   :  { %v2414_v10 = vpop.eup %2413  ;;  %2018 = vst [vmem:[#allocation2 + $0xe0] sm:$0xff] %v1974_v44   ;;  %v1231_v53 = vmul.f32 %v2412_v62, %v3091_v13 }
 0x16e   :  { %v2416_v29 = vpop.eup %2415  ;;  %v1202_v8 = vmul.f32 %v2414_v10, %v3094_v41 }
 0x16f   :  { %v2418_v39 = vpop.eup %2417  ;;  %v1234_v1 = vmul.f32 %v2416_v29, %v3096_v22 }
 0x170   :  { %v2420_v31 = vpop.eup %2419  ;;  %v1909_v16 = vpack.c.bf16 %v1202_v8, %v1201_v54  ;;  %v1200_v35 = vmul.f32 %v2418_v39, %v3101_v47 }
 0x171   :  { %v1989_v4 = vpack.c.bf16 %v1234_v1, %v1233_v6  ;;  %v1232_v15 = vmul.f32 %v2420_v31, %v3110_v45 }
 0x172   :  { %2005 = vst [vmem:[#allocation2 + $0x78] sm:$0xff] %v1909_v16   ;;  %v1904_v41 = vpack.c.bf16 %v1200_v35, %v1199_v0 }
 0x173   :  { %2021 = vst [vmem:[#allocation2 + $0xf8] sm:$0xff] %v1989_v4   ;;  %v1984_v51 = vpack.c.bf16 %v1232_v15, %v1231_v53 }
 0x174   :  { %2004 = vst [vmem:[#allocation2 + $0x70] sm:$0xff] %v1904_v41  }
 0x175   :  { %2020 = vst [vmem:[#allocation2 + $0xf0] sm:$0xff] %v1984_v51  }
 0x176   :  { %2434 = shalt.err (!%p2431_p4)
}
 0x177   :  { %s2435_s12 = scalar_lea.hbm %s3152_s4, 4096 }
 0x178   :  { %p2436_p5 = scmp.ne.s32.totalorder %s3152_s4, %s2435_s12  ;;  %p2439_p6 = scmp.lt.u32.totalorder %s2435_s12, %s3152_s4 }
 0x17a   :  { %p2441_p7 = pnand %p2439_p6, %p2436_p5 }
 0x17c   :  { %2444 = shalt.err (!%p2441_p7)
}
 0x17d   :  { %s2448_s17 = smov 64   ;;  %s2449_s18 = smov 4  }
 0x17e   :  { %1566 = dma.vmem_to_hbm [thread:$0]  %s1561_s8, 4096, %s3152_s4, [#allocation3], %s2448_s17, %s2448_s17, %s2449_s18  }
 0x17f   :  { %2445 = dma.done.wait [#allocation3], 4096  }
 0x180   :  { %2446 = vsyncadd [#allocation3], 4294963200 }
 0x181   :  { %1570 = vsyncpa [#allocation3], 1 }

</bundles_post_ra>
